<compile_context>
chip_gen: v7x
topology: tpu7x:2x2x1
jax: 0.10.0
libtpu: 0.0.40
codegen_flags: <defaults>
</compile_context>

<pallas_src>
import jax
import jax.numpy as jnp
from jax.experimental import pallas as pl
from jax.experimental.pallas import tpu as pltpu


def _round_up(a: int, m: int) -> int:
    return (a + m - 1) // m * m


def _cdiv(a: int, m: int) -> int:
    return (a + m - 1) // m


def _vmem_limit_bytes() -> int:
    """Per-generation scoped-VMEM budget: ~5/8 of physical per-TC VMEM,
    capped, with headroom left for compiler internal scratch."""
    cap = 128 * 1024 * 1024
    try:
        cap = int(pltpu.get_tpu_info().vmem_capacity_bytes)
    except Exception:
        pass  # fall back to 128 MiB parts (v5e/v6e)
    return max(16 * 1024 * 1024, min(cap * 5 // 8, 96 * 1024 * 1024))


def _linear_kernel(x_ref, wt_ref, b_ref, o_ref, acc_ref):
    """One (tm, tn) output tile. Grid = (M, N, K) with K innermost/resident."""
    k = pl.program_id(2)

    @pl.when(k == 0)
    def _():
        acc_ref[...] = jnp.zeros_like(acc_ref)

    acc_ref[...] += jnp.dot(
        x_ref[...], wt_ref[...], preferred_element_type=jnp.float32
    )

    @pl.when(k == pl.num_programs(2) - 1)
    def _():
        # Bias is f32; add once per output tile, cast only at the final store.
        o_ref[...] = (acc_ref[...] + b_ref[...]).astype(o_ref.dtype)


def _prepare_params(w, b, *, compute_dtype=None, tn=512, tk=None, tm_hint=512,
                    vmem_limit=None):
    """One-time weight layout work (hoist out of the hot path):
    W -> W^T [K, N] (lane-dense in N), pad K/N to tile multiples, bias in f32."""
    if vmem_limit is None:
        vmem_limit = _vmem_limit_bytes()
    N, K = w.shape
    cdt = jnp.dtype(compute_dtype) if compute_dtype is not None else jnp.dtype(w.dtype)
    is_bf16 = cdt == jnp.dtype(jnp.bfloat16)
    in_bytes = cdt.itemsize

    if tk is None:
        tk = 1024 if is_bf16 else 512        # bigger tk amortizes the acc RMW
    tn_ = min(tn, _round_up(N, 256))         # 256-wide feeds the 2x256x256 MXU
    tk_ = min(tk, _round_up(K, 256))

    # Keep double-buffered operands + f32 acc + double-buffered output in VMEM.
    budget = int(vmem_limit * 0.6)

    def cost(tm_, tn2, tk2):
        return (2 * (tm_ * tk2 + tk2 * tn2) * in_bytes   # x / W^T double-buffered
                + tm_ * tn2 * 4                          # f32 accumulator
                + 2 * tm_ * tn2 * 4                      # output (f32) double-buffered
                + 2 * tn2 * 4)                           # bias

    while cost(tm_hint, tn_, tk_) > budget and tk_ > 256:
        tk_ //= 2
    while cost(tm_hint, tn_, tk_) > budget and tn_ > 256:
        tn_ //= 2

    Kp, Np = _round_up(K, tk_), _round_up(N, tn_)
    wt = jnp.asarray(w).T.astype(cdt)                        # [K, N]
    if (Kp - K) or (Np - N):
        wt = jnp.pad(wt, ((0, Kp - K), (0, Np - N)))         # zeros in K are exact
    bp = jnp.asarray(b).astype(jnp.float32).reshape(1, N)    # f32 bias
    if Np - N:
        bp = jnp.pad(bp, ((0, 0), (0, Np - N)))
    return dict(wt=wt, b=bp, N=N, K=K, tn=tn_, tk=tk_, compute_dtype=cdt)


def _linear_padded(x2, params, *, out_dtype, tm=512):
    """x2: [M, K] (un-padded).  Runs the tiled Pallas GEMM on prepared params."""
    wt, bp = params["wt"], params["b"]
    N, K = params["N"], params["K"]
    tn_, tk_, cdt = params["tn"], params["tk"], params["compute_dtype"]
    Kp, Np = wt.shape
    M = x2.shape[0]

    is_bf16 = cdt == jnp.dtype(jnp.bfloat16)
    row_mult = 16 if is_bf16 else 8          # bf16 vregs pack 16 sublanes

    xc = x2.astype(cdt)
    if Kp - K:                               # only K padding is required
        xc = jnp.pad(xc, ((0, 0), (0, Kp - K)))

    tm_ = min(tm, _round_up(M, row_mult))
    # Megacore (v7x = 2 TCs): guarantee >=2 parallel (i, j) blocks when possible
    # so dimension_semantics sharding doesn't leave one core idle.
    if _cdiv(M, tm_) * (Np // tn_) < 2 and M >= 2 * row_mult:
        tm_ = max(row_mult, _round_up(_cdiv(M, 2), row_mult))

    grid = (_cdiv(M, tm_), Np // tn_, Kp // tk_)

    out = pl.pallas_call(
        _linear_kernel,
        out_shape=jax.ShapeDtypeStruct((M, Np), out_dtype),
        grid_spec=pltpu.PrefetchScalarGridSpec(
            num_scalar_prefetch=0,
            grid=grid,
            in_specs=[
                pl.BlockSpec((tm_, tk_), lambda i, j, k: (i, k)),   # x tile
                pl.BlockSpec((tk_, tn_), lambda i, j, k: (k, j)),   # W^T tile
                pl.BlockSpec((1, tn_), lambda i, j, k: (0, j)),     # f32 bias
            ],
            out_specs=pl.BlockSpec((tm_, tn_), lambda i, j, k: (i, j)),
            scratch_shapes=[pltpu.VMEM((tm_, tn_), jnp.float32)],
        ),
        compiler_params=pltpu.CompilerParams(
            dimension_semantics=("parallel", "parallel", "arbitrary"),
            vmem_limit_bytes=_vmem_limit_bytes(),
        ),
    )(xc, wt, bp)

    if Np - N:
        out = out[:, :N]                     # M was never padded
    return out


def fully_connected(x, w, b, *, compute_dtype=None, tm=512, tn=512, tk=None,
                    force_pallas=False):
    """y = x @ w.T + b (PyTorch nn.Linear forward). x: [*, K], w: [N, K], b: [N]."""
    lead = x.shape[:-1]
    K = x.shape[-1]
    N = w.shape[0]
    assert w.shape == (N, K) and b.shape == (N,)
    x2 = x.reshape(-1, K)
    M = x2.shape[0]

    # Small-problem early exit: launch/pad fixed costs dominate a 1-step grid.
    if not force_pallas and (M * N * K) <= (1 << 21):
        return (x2 @ w.T + b).reshape(*lead, N)

    params = _prepare_params(w, b, compute_dtype=compute_dtype, tn=tn, tk=tk,
                             tm_hint=tm)
    out = _linear_padded(x2, params, out_dtype=x.dtype, tm=tm)
    return out.reshape(*lead, N)


class FullyConnected:
    """JAX/Pallas port of the PyTorch module. Weight transpose/pad and the f32
    bias are prepared ONCE at construction (hoisted out of the per-call path)."""

    def __init__(self, w, b, *, compute_dtype=None, tm=512, tn=512, tk=None):
        self._N, self._K = w.shape
        self._tm = tm
        self._params = _prepare_params(w, b, compute_dtype=compute_dtype,
                                       tn=tn, tk=tk, tm_hint=tm)

    def __call__(self, x):
        assert x.shape[-1] == self._K
        lead = x.shape[:-1]
        x2 = x.reshape(-1, self._K)
        out = _linear_padded(x2, self._params, out_dtype=x.dtype, tm=self._tm)
        return out.reshape(*lead, self._N)


if __name__ == "__main__":
    key = jax.random.PRNGKey(0)
    kx, kw, kb, kx2, kw2, kb2 = jax.random.split(key, 6)

    # --- Test 1: the module's own small shapes, forced through the Pallas path.
    input_dim, output_dim, batch = 32, 16, 8
    bound = 1.0 / (input_dim ** 0.5)
    x = jax.random.normal(kx, (batch, input_dim), dtype=jnp.float32)
    w = jax.random.uniform(kw, (output_dim, input_dim), jnp.float32, -bound, bound)
    b = jax.random.uniform(kb, (output_dim,), jnp.float32, -bound, bound)

    y = fully_connected(x, w, b, force_pallas=True)
    jax.block_until_ready(y)
    ref = x @ w.T + b
    assert y.shape == ref.shape
    assert jnp.allclose(y, ref, atol=1e-5, rtol=1e-5)

    # --- Test 2: modest shape, bf16 operands with f32 accumulation, hoisted
    # weight prep, K/N padding and a partial trailing M block (M not padded).
    M2, K2, N2 = 300, 320, 200
    bound2 = 1.0 / (K2 ** 0.5)
    x_big = jax.random.normal(kx2, (M2, K2), dtype=jnp.float32)
    w_big = jax.random.uniform(kw2, (N2, K2), jnp.float32, -bound2, bound2)
    b_big = jax.random.uniform(kb2, (N2,), jnp.float32, -bound2, bound2)

    layer = FullyConnected(w_big, b_big, compute_dtype=jnp.bfloat16)
    y2 = layer(x_big)
    jax.block_until_ready(y2)

    # Reference with the same bf16-operand / f32-accumulate numerics.
    ref2 = jnp.dot(x_big.astype(jnp.bfloat16), w_big.T.astype(jnp.bfloat16),
                   preferred_element_type=jnp.float32) + b_big
    assert y2.shape == ref2.shape
    assert jnp.allclose(y2, ref2, atol=5e-3, rtol=5e-3)

    print("KERNEL_OK")
</pallas_src>

<mosaic_0001>
module attributes {stable_mosaic.version = 11 : i64} {
  func.func @_linear_kernel(%arg0: i32, %arg1: i32, %arg2: i32, %arg3: memref<8x256xf32, #tpu.memory_space<vmem>>, %arg4: memref<256x256xf32, #tpu.memory_space<vmem>>, %arg5: memref<1x256xf32, #tpu.memory_space<vmem>>, %arg6: memref<8x256xf32, #tpu.memory_space<vmem>>, %arg7: memref<8x256xf32, #tpu.memory_space<vmem>>) attributes {dimension_semantics = [#tpu.dimension_semantics<parallel>, #tpu.dimension_semantics<parallel>, #tpu.dimension_semantics<arbitrary>], iteration_bounds = array<i64: 1, 1, 1>, scalar_prefetch = 0 : i64, scratch_operands = 1 : i64, tpu.core_type = #tpu.core_type<tc>, window_params = [{transform_indices = @transform_0, window_bounds = array<i64: 8, 256>}, {transform_indices = @transform_1, window_bounds = array<i64: 256, 256>}, {transform_indices = @transform_2, window_bounds = array<i64: 1, 256>}, {transform_indices = @transform_3, window_bounds = array<i64: 8, 256>}]} {
    %c0_i32 = arith.constant 0 : i32
    %0 = arith.cmpi eq, %arg2, %c0_i32 : i32
    %1 = arith.extui %0 : i1 to i32
    %c0_i32_0 = arith.constant 0 : i32
    %2 = arith.cmpi ne, %1, %c0_i32_0 : i32
    scf.if %2 {
      %cst_10 = arith.constant 0.000000e+00 : f32
      %12 = vector.broadcast %cst_10 : f32 to vector<8x256xf32>
      %c0_11 = arith.constant 0 : index
      %c0_12 = arith.constant 0 : index
      %13 = vector.load %arg7[%c0_11, %c0_12] : memref<8x256xf32, #tpu.memory_space<vmem>>, vector<8x256xf32>
      tpu.vector_store %arg7[%c0_11, %c0_12], %12 {strides = array<i32>} : memref<8x256xf32, #tpu.memory_space<vmem>>, vector<8x256xf32>,
    } else {
    }
    %c0 = arith.constant 0 : index
    %c0_1 = arith.constant 0 : index
    %3 = vector.load %arg7[%c0, %c0_1] : memref<8x256xf32, #tpu.memory_space<vmem>>, vector<8x256xf32>
    %c0_2 = arith.constant 0 : index
    %c0_3 = arith.constant 0 : index
    %4 = vector.load %arg3[%c0_2, %c0_3] : memref<8x256xf32, #tpu.memory_space<vmem>>, vector<8x256xf32>
    %c0_4 = arith.constant 0 : index
    %c0_5 = arith.constant 0 : index
    %5 = vector.load %arg4[%c0_4, %c0_5] : memref<256x256xf32, #tpu.memory_space<vmem>>, vector<256x256xf32>
    %cst = arith.constant dense<0.000000e+00> : vector<8x256xf32>
    %6 = tpu.matmul %4, %5, %cst {dimension_numbers = #tpu.dot_dimension_numbers<[1], [0], [0], [1], [0, 0, 1, 1], [], []>} : vector<8x256xf32>, vector<256x256xf32>, vector<8x256xf32> -> vector<8x256xf32>
    %7 = arith.addf %3, %6 : vector<8x256xf32>
    %c0_6 = arith.constant 0 : index
    %c0_7 = arith.constant 0 : index
    %8 = vector.load %arg7[%c0_6, %c0_7] : memref<8x256xf32, #tpu.memory_space<vmem>>, vector<8x256xf32>
    tpu.vector_store %arg7[%c0_6, %c0_7], %7 {strides = array<i32>} : memref<8x256xf32, #tpu.memory_space<vmem>>, vector<8x256xf32>,
    %c0_i32_8 = arith.constant 0 : i32
    %9 = arith.cmpi eq, %arg2, %c0_i32_8 : i32
    %10 = arith.extui %9 : i1 to i32
    %c0_i32_9 = arith.constant 0 : i32
    %11 = arith.cmpi ne, %10, %c0_i32_9 : i32
    scf.if %11 {
      %c0_10 = arith.constant 0 : index
      %c0_11 = arith.constant 0 : index
      %12 = vector.load %arg7[%c0_10, %c0_11] : memref<8x256xf32, #tpu.memory_space<vmem>>, vector<8x256xf32>
      %c0_12 = arith.constant 0 : index
      %c0_13 = arith.constant 0 : index
      %13 = vector.load %arg5[%c0_12, %c0_13] : memref<1x256xf32, #tpu.memory_space<vmem>>, vector<1x256xf32>
      %14 = vector.broadcast %13 : vector<1x256xf32> to vector<8x256xf32>
      %15 = arith.addf %12, %14 : vector<8x256xf32>
      %c0_14 = arith.constant 0 : index
      %c0_15 = arith.constant 0 : index
      %16 = vector.load %arg6[%c0_14, %c0_15] : memref<8x256xf32, #tpu.memory_space<vmem>>, vector<8x256xf32>
      tpu.vector_store %arg6[%c0_14, %c0_15], %15 {strides = array<i32>} : memref<8x256xf32, #tpu.memory_space<vmem>>, vector<8x256xf32>,
    } else {
    }
    return
  }
  func.func @transform_0(%arg0: i32, %arg1: i32, %arg2: i32) -> (i32, i32) {
    %c0_i32 = arith.constant 0 : i32
    return %arg0, %arg2 : i32, i32
  }
  func.func @transform_1(%arg0: i32, %arg1: i32, %arg2: i32) -> (i32, i32) {
    %c0_i32 = arith.constant 0 : i32
    return %arg2, %arg1 : i32, i32
  }
  func.func @transform_2(%arg0: i32, %arg1: i32, %arg2: i32) -> (i32, i32) {
    %c0_i32 = arith.constant 0 : i32
    %c0_i32_0 = arith.constant 0 : i32
    return %c0_i32, %arg1 : i32, i32
  }
  func.func @transform_3(%arg0: i32, %arg1: i32, %arg2: i32) -> (i32, i32) {
    %c0_i32 = arith.constant 0 : i32
    return %arg0, %arg1 : i32, i32
  }
}

</mosaic_0001>

<bundles_post_ra>
// kernel: tpu_custom_call.1
= control target key start
LH: loop header
LB: loop body
LE: loop exit
PB: predicated region body
PF: predicated region fallthrough
CT: control target
= control target key end

     0   :  { %8 = vsyncpa [#allocation4], 0  ;;  %s476_s0 = inlined_call_operand.hbm [shape: f32[8,256], index: 0, kind: input, shape index: {}]   ;;  %s477_s1 = inlined_call_operand.hbm [shape: f32[256,256], index: 1, kind: input, shape index: {}]   ;;  %s478_s2 = inlined_call_operand.hbm [shape: f32[1,256], index: 2, kind: input, shape index: {}]   ;;  %s479_s3 = inlined_call_operand.hbm [shape: f32[8,256], index: 3, kind: output, shape index: {}]  }
   0x1   :  { %9 = vsyncpa [#allocation7], 0 }
   0x2   :  { %10 = vsyncpa [#allocation5], 0  ;;  %s402_s12 = smov [#allocation6]   ;;  %s308_s16 = scalar_lea.hbm %s477_s1, 8192 }
   0x3   :  { %s26_s13 = sshll.u32 %s402_s12, 4  ;;  %p309_p0 = scmp.ne.s32.totalorder %s477_s1, %s308_s16  ;;  %s27_s13 = int_to_ptr.vmem [resolvable:$true] %s26_s13 }
   0x4   :  { %p312_p1 = scmp.lt.u32.totalorder %s308_s16, %s477_s1 }
   0x6   :  { %p314_p2 = pnand %p312_p1, %p309_p0 }
   0x8   :  { %317 = shalt.err (!%p314_p2)
}
   0x9   :  { %s318_s21 = scalar_lea.vmem %s27_s13, 8192  ;;  %p323_p4 = scmp.lt.s32.totalorder %s27_s13, %s27_s13 }
   0xa   :  { %p319_p3 = scmp.ne.s32.totalorder %s27_s13, %s318_s21  ;;  %p324_p5 = scmp.lt.s32.totalorder %s318_s21, %s318_s21 }
   0xc   :  { %p325_p6 = por %p324_p5, %p323_p4 }
   0xe   :  { %p326_p7 = pnand %p325_p6, %p319_p3 }
  0x10   :  { %329 = shalt.err (!%p326_p7)
}
  0x11   :  { %s403_s22 = smov 256   ;;  %s404_s23 = smov 16  }
  0x12   :  { %32 = dma.hbm_to_vmem [thread:$0]  %s477_s1, 8192, %s27_s13, [#allocation7], %s403_s22, %s403_s22, %s404_s23  }
  0x13   :  { %s405_s26 = smov [#allocation3]   ;;  %s406_s28 = smov [#allocation8]  }
  0x14   :  { %s17_s27 = sshll.u32 %s405_s26, 4  ;;  %s39_s29 = sshll.u32 %s406_s28, 4  ;;  %s18_s27 = int_to_ptr.vmem [resolvable:$true] %s17_s27  ;;  %s40_s29 = int_to_ptr.vmem [resolvable:$true] %s39_s29 }
  0x15   :  { %s330_s5 = scalar_lea.hbm %s476_s0, 256 }
  0x16   :  { %p331_p8 = scmp.ne.s32.totalorder %s476_s0, %s330_s5  ;;  %p334_p9 = scmp.lt.u32.totalorder %s330_s5, %s476_s0 }
  0x18   :  { %p336_p10 = pnand %p334_p9, %p331_p8 }
  0x1a   :  { %339 = shalt.err (!%p336_p10)
}
  0x1b   :  { %s340_s1 = scalar_lea.vmem %s18_s27, 256  ;;  %p345_p12 = scmp.lt.s32.totalorder %s18_s27, %s18_s27 }
  0x1c   :  { %p341_p11 = scmp.ne.s32.totalorder %s18_s27, %s340_s1  ;;  %p346_p13 = scmp.lt.s32.totalorder %s340_s1, %s340_s1 }
  0x1e   :  { %p347_p0 = por %p346_p13, %p345_p12 }
  0x20   :  { %p348_p1 = pnand %p347_p0, %p341_p11 }
  0x22   :  { %351 = shalt.err (!%p348_p1)
}
  0x23   :  { %20 = dma.hbm_to_vmem [thread:$0]  %s476_s0, 256, %s18_s27, [#allocation4]  }
  0x24   :  { %s352_s14 = scalar_lea.hbm %s478_s2, 32 }
  0x25   :  { %p353_p2 = scmp.ne.s32.totalorder %s478_s2, %s352_s14  ;;  %p356_p3 = scmp.lt.u32.totalorder %s352_s14, %s478_s2 }
  0x27   :  { %p358_p4 = pnand %p356_p3, %p353_p2 }
  0x29   :  { %361 = shalt.err (!%p358_p4)
}
  0x2a   :  { %s362_s19 = scalar_lea.vmem %s40_s29, 32  ;;  %p367_p6 = scmp.lt.s32.totalorder %s40_s29, %s40_s29 }
  0x2b   :  { %p363_p5 = scmp.ne.s32.totalorder %s40_s29, %s362_s19  ;;  %p368_p7 = scmp.lt.s32.totalorder %s362_s19, %s362_s19 }
  0x2d   :  { %p369_p8 = por %p368_p7, %p367_p6 }
  0x2f   :  { %p370_p9 = pnand %p369_p8, %p363_p5 }
  0x31   :  { %373 = shalt.err (!%p370_p9)
}
  0x32   :  { %42 = dma.hbm_to_vmem [thread:$0]  %s478_s2, 32, %s40_s29, [#allocation7]  }
  0x33   :  { %396 = dma.done.wait [#allocation4], 256  }
  0x34   :  { %397 = vsyncadd [#allocation4], 4294967040 }
  0x35   :  { %398 = dma.done.wait [#allocation7], 8224  }
  0x36   :  { %399 = vsyncadd [#allocation7], 4294959072  ;;  %v63_v0 = vld [vmem:[#allocation6 + $0x8] sm:$0xff]  ;;  %v65_v1 = vld [vmem:[#allocation6 + $0x18] sm:$0xff]  ;;  %s407_s2 = smov [#allocation9]  }
  0x37   :  { %v62_v2 = vld [vmem:[#allocation6] sm:$0xff]  ;;  %v238_v3 = vpack.c.bf16 %v65_v1, %v63_v0  ;;  %v64_v4 = vld [vmem:[#allocation6 + $0x10] sm:$0xff]  ;;  %v67_v5 = vld [vmem:[#allocation6 + $0x28] sm:$0xff]  ;;  %s228_s21 = sshll.u32 %s407_s2, 4  ;;  %s229_s21 = int_to_ptr.vmem [resolvable:$true] %s228_s21 }
  0x38   :  { %v69_v6 = vld [vmem:[#allocation6 + $0x38] sm:$0xff]  ;;  %v240_v7 = vpack.c.bf16 %v64_v4, %v62_v2  ;;  %v66_v9 = vld [vmem:[#allocation6 + $0x20] sm:$0xff]  ;;  %v68_v10 = vld [vmem:[#allocation6 + $0x30] sm:$0xff]  ;;  %s374_s22 = scalar_lea.vmem %s229_s21, 256  ;;  %p379_p11 = scmp.lt.s32.totalorder %s229_s21, %s229_s21 }
  0x39   :  { %v242_v8 = vpack.c.bf16 %v69_v6, %v67_v5  ;;  %v71_v11 = vld [vmem:[#allocation6 + $0x48] sm:$0xff]  ;;  %239 = vmatprep.subr.bf16.mxu0 %v238_v3  ;;  %v73_v12 = vld [vmem:[#allocation6 + $0x58] sm:$0xff]  ;;  %v244_v13 = vpack.c.bf16 %v68_v10, %v66_v9  ;;  %v70_v15 = vld [vmem:[#allocation6 + $0x40] sm:$0xff]  ;;  %p375_p10 = scmp.ne.s32.totalorder %s229_s21, %s374_s22  ;;  %p380_p12 = scmp.lt.s32.totalorder %s374_s22, %s374_s22 }
  0x3a   :  { %241 = vmatpush1.bf16.msra.mxu0 %v240_v7  ;;  %v246_v14 = vpack.c.bf16 %v73_v12, %v71_v11  ;;  %v72_v16 = vld [vmem:[#allocation6 + $0x50] sm:$0xff]  ;;  %v75_v17 = vld [vmem:[#allocation6 + $0x68] sm:$0xff]  ;;  %v77_v18 = vld [vmem:[#allocation6 + $0x78] sm:$0xff] }
  0x3b   :  { %243 = vmatprep.subr.bf16.mxu0 %v242_v8  ;;  %v248_v19 = vpack.c.bf16 %v72_v16, %v70_v15  ;;  %v250_v20 = vpack.c.bf16 %v77_v18, %v75_v17  ;;  %v74_v21 = vld [vmem:[#allocation6 + $0x60] sm:$0xff]  ;;  %v76_v22 = vld [vmem:[#allocation6 + $0x70] sm:$0xff]  ;;  %v79_v23 = vld [vmem:[#allocation6 + $0x88] sm:$0xff]  ;;  %p381_p13 = por %p380_p12, %p379_p11 }
  0x3c   :  { %v81_v24 = vld [vmem:[#allocation6 + $0x98] sm:$0xff]  ;;  %v252_v25 = vpack.c.bf16 %v76_v22, %v74_v21  ;;  %v78_v27 = vld [vmem:[#allocation6 + $0x80] sm:$0xff]  ;;  %v80_v28 = vld [vmem:[#allocation6 + $0x90] sm:$0xff] }
  0x3d   :  { %v254_v26 = vpack.c.bf16 %v81_v24, %v79_v23  ;;  %v83_v29 = vld [vmem:[#allocation6 + $0xa8] sm:$0xff]  ;;  %v85_v30 = vld [vmem:[#allocation6 + $0xb8] sm:$0xff]  ;;  %v256_v31 = vpack.c.bf16 %v80_v28, %v78_v27  ;;  %v82_v33 = vld [vmem:[#allocation6 + $0xa0] sm:$0xff]  ;;  %p382_p0 = pnand %p381_p13, %p375_p10 }
  0x3e   :  { %245 = vmatpush1.bf16.msra.mxu0 %v244_v13  ;;  %v258_v32 = vpack.c.bf16 %v85_v30, %v83_v29  ;;  %v84_v34 = vld [vmem:[#allocation6 + $0xb0] sm:$0xff]  ;;  %v87_v35 = vld [vmem:[#allocation6 + $0xc8] sm:$0xff]  ;;  %v89_v36 = vld [vmem:[#allocation6 + $0xd8] sm:$0xff] }
  0x3f   :  { %247 = vmatprep.subr.bf16.mxu0 %v246_v14  ;;  %v260_v37 = vpack.c.bf16 %v84_v34, %v82_v33  ;;  %v262_v38 = vpack.c.bf16 %v89_v36, %v87_v35  ;;  %v86_v39 = vld [vmem:[#allocation6 + $0xc0] sm:$0xff]  ;;  %v88_v40 = vld [vmem:[#allocation6 + $0xd0] sm:$0xff]  ;;  %v61_v41 = vld [vmem:[#allocation3 + $0x8] sm:$0xff]  ;;  %v208_v34 = vlaneseq }
  0x40   :  { %v91_v42 = vld [vmem:[#allocation6 + $0xe8] sm:$0xff]  ;;  %v93_v43 = vld [vmem:[#allocation6 + $0xf8] sm:$0xff]  ;;  %190 = vmatprep.mubr.f32.mxu0 %v61_v41  ;;  %v264_v44 = vpack.c.bf16 %v88_v40, %v86_v39  ;;  %v90_v46 = vld [vmem:[#allocation6 + $0xe0] sm:$0xff] }
  0x41   :  { %v266_v45 = vpack.c.bf16 %v93_v43, %v91_v42  ;;  %v92_v47 = vld [vmem:[#allocation6 + $0xf0] sm:$0xff]  ;;  %v95_v48 = vld [vmem:[#allocation6 + $0x108] sm:$0xff]  ;;  %v97_v49 = vld [vmem:[#allocation6 + $0x118] sm:$0xff]  ;;  %v209_v35 = vshrl.u32 %v208_v34, 7 }
  0x42   :  { %249 = vmatpush1.bf16.msra.mxu0 %v248_v19  ;;  %v268_v50 = vpack.c.bf16 %v92_v47, %v90_v46  ;;  %v270_v51 = vpack.c.bf16 %v97_v49, %v95_v48  ;;  %v94_v52 = vld [vmem:[#allocation6 + $0x100] sm:$0xff]  ;;  %v96_v53 = vld [vmem:[#allocation6 + $0x110] sm:$0xff]  ;;  %v99_v54 = vld [vmem:[#allocation6 + $0x128] sm:$0xff] }
  0x43   :  { %251 = vmatprep.subr.bf16.mxu0 %v250_v20  ;;  %v101_v55 = vld [vmem:[#allocation6 + $0x138] sm:$0xff]  ;;  %v272_v56 = vpack.c.bf16 %v96_v53, %v94_v52  ;;  %v98_v58 = vld [vmem:[#allocation6 + $0x120] sm:$0xff]  ;;  %v100_v59 = vld [vmem:[#allocation6 + $0x130] sm:$0xff]  ;;  %v210_v36 = vsub.s32 0, %v209_v35 }
  0x44   :  { %v274_v57 = vpack.c.bf16 %v101_v55, %v99_v54  ;;  %v103_v60 = vld [vmem:[#allocation6 + $0x148] sm:$0xff]  ;;  %v105_v61 = vld [vmem:[#allocation6 + $0x158] sm:$0xff]  ;;  %v276_v62 = vpack.c.bf16 %v100_v59, %v98_v58  ;;  %v102_v0 = vld [vmem:[#allocation6 + $0x140] sm:$0xff] }
  0x45   :  { %v278_v63 = vpack.c.bf16 %v105_v61, %v103_v60  ;;  %v104_v1 = vld [vmem:[#allocation6 + $0x150] sm:$0xff]  ;;  %v107_v2 = vld [vmem:[#allocation6 + $0x168] sm:$0xff]  ;;  %v109_v3 = vld [vmem:[#allocation6 + $0x178] sm:$0xff] }
  0x46   :  { %253 = vmatpush1.bf16.msra.mxu0 %v252_v25  ;;  %v280_v4 = vpack.c.bf16 %v104_v1, %v102_v0  ;;  %v282_v5 = vpack.c.bf16 %v109_v3, %v107_v2  ;;  %v106_v6 = vld [vmem:[#allocation6 + $0x160] sm:$0xff]  ;;  %v108_v7 = vld [vmem:[#allocation6 + $0x170] sm:$0xff]  ;;  %v111_v8 = vld [vmem:[#allocation6 + $0x188] sm:$0xff] }
  0x47   :  { %255 = vmatprep.subr.bf16.mxu0 %v254_v26  ;;  %v113_v9 = vld [vmem:[#allocation6 + $0x198] sm:$0xff]  ;;  %v284_v10 = vpack.c.bf16 %v108_v7, %v106_v6  ;;  %v110_v12 = vld [vmem:[#allocation6 + $0x180] sm:$0xff]  ;;  %v112_v13 = vld [vmem:[#allocation6 + $0x190] sm:$0xff] }
  0x48   :  { %v286_v11 = vpack.c.bf16 %v113_v9, %v111_v8  ;;  %v115_v14 = vld [vmem:[#allocation6 + $0x1a8] sm:$0xff]  ;;  %v117_v15 = vld [vmem:[#allocation6 + $0x1b8] sm:$0xff]  ;;  %v288_v16 = vpack.c.bf16 %v112_v13, %v110_v12  ;;  %v114_v18 = vld [vmem:[#allocation6 + $0x1a0] sm:$0xff] }
  0x49   :  { %v290_v17 = vpack.c.bf16 %v117_v15, %v115_v14  ;;  %v116_v19 = vld [vmem:[#allocation6 + $0x1b0] sm:$0xff]  ;;  %v119_v20 = vld [vmem:[#allocation6 + $0x1c8] sm:$0xff]  ;;  %v121_v21 = vld [vmem:[#allocation6 + $0x1d8] sm:$0xff] }
  0x4a   :  { %257 = vmatpush1.bf16.msra.mxu0 %v256_v31  ;;  %v292_v22 = vpack.c.bf16 %v116_v19, %v114_v18  ;;  %v294_v23 = vpack.c.bf16 %v121_v21, %v119_v20  ;;  %v118_v24 = vld [vmem:[#allocation6 + $0x1c0] sm:$0xff]  ;;  %v120_v25 = vld [vmem:[#allocation6 + $0x1d0] sm:$0xff]  ;;  %v123_v26 = vld [vmem:[#allocation6 + $0x1e8] sm:$0xff] }
  0x4b   :  { %259 = vmatprep.subr.bf16.mxu0 %v258_v32  ;;  %v125_v27 = vld [vmem:[#allocation6 + $0x1f8] sm:$0xff]  ;;  %v296_v28 = vpack.c.bf16 %v120_v25, %v118_v24  ;;  %v122_v30 = vld [vmem:[#allocation6 + $0x1e0] sm:$0xff]  ;;  %v124_v31 = vld [vmem:[#allocation6 + $0x1f0] sm:$0xff] }
  0x4c   :  { %v298_v29 = vpack.c.bf16 %v125_v27, %v123_v26  ;;  %v300_v32 = vpack.c.bf16 %v124_v31, %v122_v30  ;;  %v60_v33 = vld [vmem:[#allocation3] sm:$0xff] }
  0x4e   :  { %261 = vmatpush1.bf16.msra.mxu0 %v260_v37  ;;  %v206_v37 = vld [vmem:[#allocation8] sm:$0x3] }
  0x4f   :  { %263 = vmatprep.subr.bf16.mxu0 %v262_v38  ;;  %v214_v38 = vsub.s32 1, %v209_v35  ;;  %v211_v39 = vrot.slane %v206_v37, %v210_v36 }
  0x51   :  { %v215_v40 = vrot.slane %v206_v37, %v214_v38 }
  0x52   :  { %265 = vmatpush1.bf16.msra.mxu0 %v264_v44 }
  0x53   :  { %267 = vmatprep.subr.bf16.mxu0 %v266_v45 }
  0x56   :  { %269 = vmatpush1.bf16.msra.mxu0 %v268_v50 }
  0x57   :  { %271 = vmatprep.subr.bf16.mxu0 %v270_v51 }
  0x5a   :  { %273 = vmatpush1.bf16.msra.mxu0 %v272_v56 }
  0x5b   :  { %275 = vmatprep.subr.bf16.mxu0 %v274_v57 }
  0x5e   :  { %277 = vmatpush1.bf16.msra.mxu0 %v276_v62 }
  0x5f   :  { %279 = vmatprep.subr.bf16.mxu0 %v278_v63 }
  0x62   :  { %281 = vmatpush1.bf16.msra.mxu0 %v280_v4 }
  0x63   :  { %283 = vmatprep.subr.bf16.mxu0 %v282_v5 }
  0x66   :  { %285 = vmatpush1.bf16.msra.mxu0 %v284_v10 }
  0x67   :  { %287 = vmatprep.subr.bf16.mxu0 %v286_v11 }
  0x6a   :  { %289 = vmatpush1.bf16.msra.mxu0 %v288_v16 }
  0x6b   :  { %291 = vmatprep.subr.bf16.mxu0 %v290_v17 }
  0x6e   :  { %293 = vmatpush1.bf16.msra.mxu0 %v292_v22 }
  0x6f   :  { %295 = vmatprep.subr.bf16.mxu0 %v294_v23 }
  0x72   :  { %297 = vmatpush1.bf16.msra.mxu0 %v296_v28 }
  0x73   :  { %299 = vmatprep.subr.bf16.mxu0 %v298_v29 }
  0x76   :  { %301 = vmatpush1.bf16.msra.mxu0 %v300_v32 }
  0x79   :  { %191 = vmatmul.mubr.f32.vlgmr.msra.gmra.mrb[0].mxu0 %v60_v33 }
 0x14c   :  { %v192_v41 = vpop.f32.mrb[0].mxu0 }
 0x14d   :  { %v218_v42 = vadd.f32 %v211_v39, %v192_v41  ;;  %v194_v43 = vpop.f32.mrb[1].mxu0 }
 0x14e   :  { %v219_v44 = vadd.f32 %v215_v40, %v194_v43 }
 0x14f   :  { %220 = vst [vmem:[#allocation9] sm:$0xff] %v218_v42 }
 0x150   :  { %221 = vst [vmem:[#allocation9 + $0x8] sm:$0xff] %v219_v44 }
 0x151   :  { %385 = shalt.err (!%p382_p0)
}
 0x152   :  { %s386_s25 = scalar_lea.hbm %s479_s3, 256 }
 0x153   :  { %p387_p1 = scmp.ne.s32.totalorder %s479_s3, %s386_s25  ;;  %p390_p2 = scmp.lt.u32.totalorder %s386_s25, %s479_s3 }
 0x155   :  { %p392_p3 = pnand %p390_p2, %p387_p1 }
 0x157   :  { %395 = shalt.err (!%p392_p3)
}
 0x158   :  { %231 = dma.vmem_to_hbm [thread:$0]  %s229_s21, 256, %s479_s3, [#allocation5]  }
 0x159   :  { %400 = dma.done.wait [#allocation5], 256  }
 0x15a   :  { %401 = vsyncadd [#allocation5], 4294967040 }
 0x15b   :  { %235 = vsyncpa [#allocation4], 1 }
 0x15c   :  { %236 = vsyncpa [#allocation7], 1 }
 0x15d   :  { %237 = vsyncpa [#allocation5], 1 }

</bundles_post_ra>
